<compile_context>
chip_gen: v5e
topology: v5e:2x2
jax: 0.10.0
libtpu: 0.0.40
codegen_flags: <defaults>
</compile_context>

<pallas_src>
import jax
import jax.numpy as jnp
from jax.experimental import pallas as pl
from jax.experimental.pallas import tpu as pltpu


# ----------------------------------------------------------------------------
# 1. forward(x) = x
#    Per the performance review, an identity pallas_call only burns 2*size bytes
#    of HBM traffic for zero compute, so the production path just returns x.
# ----------------------------------------------------------------------------
def supervised_keypoint_forward(x):
    """Exact semantics of SupervisedKeypoint.forward: returns x unchanged."""
    return x


# ----------------------------------------------------------------------------
# 2. CrossEntropyLoss (mean reduction) on NCHW logits — the module's loss.
#    logits: [B, C, H, W] float, labels: [B, H, W] int -> scalar mean loss.
# ----------------------------------------------------------------------------
def _make_ce_partial_kernel(num_classes, hw, tile):
    """Per-(batch, spatial-tile) partial-sum cross-entropy kernel.

    Layout: the logits block is (C, tile) — class axis on sublanes (C == full
    extent, padded to 8 sublanes at most), spatial axis lane-dense (tile is a
    multiple of 128 or the full H*W).  All math in f32 (cast once on load).
    """
    needs_mask = (hw % tile) != 0

    def kernel(logits_ref, labels_ref, out_ref):
        logits = logits_ref[0].astype(jnp.float32)   # (C, tile) f32
        labels = labels_ref[0]                       # (1, tile) int32

        # numerically-stable log-sum-exp over the class (sublane) axis
        row_max = jnp.max(logits, axis=0, keepdims=True)                      # (1, tile)
        lse = jnp.log(jnp.sum(jnp.exp(logits - row_max), axis=0, keepdims=True)) + row_max

        # pick the label logit via a sublane one-hot (no dynamic gather needed)
        cls = jax.lax.broadcasted_iota(jnp.int32, (num_classes, tile), 0)     # (C, tile)
        onehot = (cls == labels).astype(jnp.float32)                          # broadcast (1,tile)
        picked = jnp.sum(logits * onehot, axis=0, keepdims=True)              # (1, tile)

        contrib = lse - picked                                                # (1, tile)
        if needs_mask:
            # mask out-of-range spatial positions in the (padded) tail tile
            j = pl.program_id(1)
            pos = j * tile + jax.lax.broadcasted_iota(jnp.int32, (1, tile), 1)
            contrib = jnp.where(pos < hw, contrib, 0.0)

        out_ref[...] = jnp.sum(contrib).reshape(1, 1, 1, 1)

    return kernel


def cross_entropy_loss_nchw(logits_bchw, labels_bhw, *, max_spatial_tile=8192):
    """nn.CrossEntropyLoss()(logits, labels), mean reduction.

    logits_bchw: [B, C, H, W] float (f32 or bf16; math runs in f32).
    labels_bhw:  [B, H, W] integer class indices in [0, C).
    """
    B, C, H, W = logits_bchw.shape
    hw = H * W

    # Free row-major reshapes — no transpose, no extra HBM traffic.
    logits = logits_bchw.reshape(B, C, hw)
    labels = labels_bhw.astype(jnp.int32).reshape(B, 1, hw)

    # Lane-dense spatial tile: full H*W if small, else a big multiple of 128.
    if hw <= max_spatial_tile:
        tile = hw
    else:
        tile = max(128, (max_spatial_tile // 128) * 128)
    num_tiles = pl.cdiv(hw, tile)

    partials = pl.pallas_call(
        _make_ce_partial_kernel(C, hw, tile),
        out_shape=jax.ShapeDtypeStruct((B, num_tiles, 1, 1), jnp.float32),
        grid_spec=pltpu.PrefetchScalarGridSpec(
            num_scalar_prefetch=0,
            grid=(B, num_tiles),
            in_specs=[
                # logits block: (1, C, tile) — class axis = full extent (sublanes),
                # spatial axis lane-dense.
                pl.BlockSpec((1, C, tile), lambda b, j: (b, 0, j)),
                # labels block: (1, 1, tile) — lane-dense int32 labels.
                pl.BlockSpec((1, 1, tile), lambda b, j: (b, 0, j)),
            ],
            # One scalar partial sum per grid cell -> fully parallel grid,
            # tree-summed below (better f32 accuracy than a serial accumulator).
            out_specs=pl.BlockSpec((1, 1, 1, 1), lambda b, j: (b, j, 0, 0)),
        ),
        compiler_params=pltpu.CompilerParams(
            dimension_semantics=("parallel", "parallel"),
            vmem_limit_bytes=32 * 1024 * 1024,
        ),
    )(logits, labels)

    return jnp.sum(partials) / jnp.float32(B * hw)


# ----------------------------------------------------------------------------
# Reference (pure JAX) implementation for verification.
# ----------------------------------------------------------------------------
def _ce_ref_nchw(logits_bchw, labels_bhw):
    logp = jax.nn.log_softmax(logits_bchw.astype(jnp.float32), axis=1)     # (B,C,H,W)
    picked = jnp.take_along_axis(logp, labels_bhw[:, None].astype(jnp.int32), axis=1)
    return -jnp.mean(picked)


if __name__ == "__main__":
    key = jax.random.PRNGKey(0)
    k_img, k_logits, k_labels, k_logits2, k_labels2 = jax.random.split(key, 5)

    # ---- forward pass (identity) ----
    B, C, H, W = 2, 4, 16, 16
    x = jax.random.normal(k_img, (B, C, H, W), dtype=jnp.float32)
    y = supervised_keypoint_forward(x)
    y = jax.block_until_ready(y)
    assert y.shape == x.shape and y.dtype == x.dtype
    assert bool(jnp.allclose(y, x))

    # ---- CrossEntropyLoss, case 1: H*W fits a single full-extent spatial tile ----
    logits = jax.random.normal(k_logits, (B, C, H, W), dtype=jnp.float32)
    labels = jax.random.randint(k_labels, (B, H, W), 0, C, dtype=jnp.int32)
    loss = jax.block_until_ready(cross_entropy_loss_nchw(logits, labels))
    loss_ref = _ce_ref_nchw(logits, labels)
    assert bool(jnp.allclose(loss, loss_ref, atol=1e-5, rtol=1e-5)), (loss, loss_ref)

    # ---- CrossEntropyLoss, case 2: multi-tile grid with a masked tail tile ----
    H2, W2 = 16, 20                           # H*W = 320 -> tiles of 256 + masked tail
    logits2 = jax.random.normal(k_logits2, (B, C, H2, W2), dtype=jnp.float32)
    labels2 = jax.random.randint(k_labels2, (B, H2, W2), 0, C, dtype=jnp.int32)
    loss2 = jax.block_until_ready(
        cross_entropy_loss_nchw(logits2, labels2, max_spatial_tile=256)
    )
    loss2_ref = _ce_ref_nchw(logits2, labels2)
    assert bool(jnp.allclose(loss2, loss2_ref, atol=1e-5, rtol=1e-5)), (loss2, loss2_ref)

    print("KERNEL_OK")
</pallas_src>

<mosaic_0001>
module attributes {stable_mosaic.version = 11 : i64} {
  func.func @kernel(%arg0: i32, %arg1: i32, %arg2: memref<1x4x256xf32, #tpu.memory_space<vmem>>, %arg3: memref<1x1x256xi32, #tpu.memory_space<vmem>>, %arg4: memref<1x1x1x1xf32, #tpu.memory_space<vmem>>) attributes {dimension_semantics = [#tpu.dimension_semantics<parallel>, #tpu.dimension_semantics<parallel>], iteration_bounds = array<i64: 2, 1>, scalar_prefetch = 0 : i64, scratch_operands = 0 : i64, tpu.core_type = #tpu.core_type<tc>, window_params = [{transform_indices = @transform_0, window_bounds = array<i64: 1, 4, 256>}, {transform_indices = @transform_1, window_bounds = array<i64: 1, 1, 256>}, {transform_indices = @transform_2, window_bounds = array<i64: 1, 1, 1, 1>}]} {
    %c0 = arith.constant 0 : index
    %c0_0 = arith.constant 0 : index
    %c0_1 = arith.constant 0 : index
    %0 = vector.load %arg2[%c0, %c0_0, %c0_1] : memref<1x4x256xf32, #tpu.memory_space<vmem>>, vector<1x4x256xf32>
    %1 = vector.shape_cast %0 : vector<1x4x256xf32> to vector<4x256xf32>
    %c0_2 = arith.constant 0 : index
    %c0_3 = arith.constant 0 : index
    %c0_4 = arith.constant 0 : index
    %2 = vector.load %arg3[%c0_2, %c0_3, %c0_4] : memref<1x1x256xi32, #tpu.memory_space<vmem>>, vector<1x1x256xi32>
    %3 = vector.shape_cast %2 : vector<1x1x256xi32> to vector<1x256xi32>
    %cst = arith.constant dense<0xFF800000> : vector<256xf32>
    %4 = vector.multi_reduction <maximumf>, %1, %cst [0] : vector<4x256xf32> to vector<256xf32>
    %5 = vector.shape_cast %4 : vector<256xf32> to vector<1x256xf32>
    %6 = vector.broadcast %5 : vector<1x256xf32> to vector<4x256xf32>
    %7 = arith.subf %1, %6 : vector<4x256xf32>
    %8 = math.exp %7 : vector<4x256xf32>
    %cst_5 = arith.constant dense<0.000000e+00> : vector<256xf32>
    %9 = vector.multi_reduction <add>, %8, %cst_5 [0] : vector<4x256xf32> to vector<256xf32>
    %10 = vector.shape_cast %9 : vector<256xf32> to vector<1x256xf32>
    %11 = math.log %10 : vector<1x256xf32>
    %12 = arith.addf %11, %5 : vector<1x256xf32>
    %13 = tpu.iota {dimensions = array<i32: 0>} : vector<4x256xi32>
    %14 = vector.broadcast %3 : vector<1x256xi32> to vector<4x256xi32>
    %15 = arith.cmpi eq, %13, %14 : vector<4x256xi32>
    %16 = arith.extui %15 : vector<4x256xi1> to vector<4x256xi32>
    %17 = arith.sitofp %16 : vector<4x256xi32> to vector<4x256xf32>
    %18 = arith.mulf %1, %17 : vector<4x256xf32>
    %cst_6 = arith.constant dense<0.000000e+00> : vector<256xf32>
    %19 = vector.multi_reduction <add>, %18, %cst_6 [0] : vector<4x256xf32> to vector<256xf32>
    %20 = vector.shape_cast %19 : vector<256xf32> to vector<1x256xf32>
    %21 = arith.subf %12, %20 : vector<1x256xf32>
    %22 = vector.shape_cast %21 : vector<1x256xf32> to vector<1x1x256xf32>
    %cst_7 = arith.constant dense<0.000000e+00> : vector<1xf32>
    %23 = vector.multi_reduction <add>, %22, %cst_7 [1, 2] : vector<1x1x256xf32> to vector<1xf32>
    %24 = vector.shape_cast %23 : vector<1xf32> to vector<1x1x1xf32>
    %25 = vector.extract %24[0, 0, 0] : f32 from vector<1x1x1xf32>
    %26 = vector.broadcast %25 : f32 to vector<1x1x1x1xf32>
    %c0_8 = arith.constant 0 : index
    %c0_9 = arith.constant 0 : index
    %c0_10 = arith.constant 0 : index
    %c0_11 = arith.constant 0 : index
    %27 = vector.load %arg4[%c0_8, %c0_9, %c0_10, %c0_11] : memref<1x1x1x1xf32, #tpu.memory_space<vmem>>, vector<1x1x1x1xf32>
    tpu.vector_store %arg4[%c0_8, %c0_9, %c0_10, %c0_11], %26 {strides = array<i32>} : memref<1x1x1x1xf32, #tpu.memory_space<vmem>>, vector<1x1x1x1xf32>,
    return
  }
  func.func @transform_0(%arg0: i32, %arg1: i32) -> (i32, i32, i32) {
    %c0_i32 = arith.constant 0 : i32
    %c0_i32_0 = arith.constant 0 : i32
    return %arg0, %c0_i32, %arg1 : i32, i32, i32
  }
  func.func @transform_1(%arg0: i32, %arg1: i32) -> (i32, i32, i32) {
    %c0_i32 = arith.constant 0 : i32
    %c0_i32_0 = arith.constant 0 : i32
    return %arg0, %c0_i32, %arg1 : i32, i32, i32
  }
  func.func @transform_2(%arg0: i32, %arg1: i32) -> (i32, i32, i32, i32) {
    %c0_i32 = arith.constant 0 : i32
    %c0_i32_0 = arith.constant 0 : i32
    %c0_i32_1 = arith.constant 0 : i32
    return %arg0, %arg1, %c0_i32, %c0_i32_0 : i32, i32, i32, i32
  }
}

</mosaic_0001>

<bundles_post_ra>
// kernel: tpu_custom_call.1
= control target key start
LH: loop header
LB: loop body
LE: loop exit
PB: predicated region body
PF: predicated region fallthrough
CT: control target
= control target key end

     0   :  { %7 = vsyncpa [#allocation3], 0  ;;  %s775_s0 = inlined_call_operand.hbm [shape: f32[2,4,256], index: 0, kind: input, shape index: {}]   ;;  %s776_s1 = inlined_call_operand.hbm [shape: s32[2,1,256], index: 1, kind: input, shape index: {}]   ;;  %s777_s2 = inlined_call_operand.vmem [shape: f32[2,1,1,1], index: 2, kind: output, shape index: {}]  }
   0x1   :  { %9 = vsyncpa [#allocation3 + $0x1], 0 }
   0x2   :  { %10 = vsyncpa [#allocation5], 0 }
   0x3   :  { %12 = vsyncpa [#allocation5 + $0x1], 0  ;;  %s663_s9 = smov 0   ;;  %s665_s10 = smov 0  }
   0x4   :  { %s667_s11 = smov 0   ;;  %s669_s12 = smov 0  }
   0x5   :  { %s671_s13 = smov 0   ;;  %s673_s14 = smov 0  }
   0x6 LB: > { %s445_s15 = sadd.s32 4294967295, %s645_s14   ;;  %s30_s16 = sadd.s32 1, %s641_s13  ;;  %s645_s14 = sphi %s673_s14, %s18_s14   ;;  %s641_s13 = sphi %s671_s13, %s785_s13   ;;  %s637_s12 = sphi %s669_s12, %s784_s12   ;;  %s633_s11 = sphi %s667_s11, %s783_s11   ;;  %s629_s10 = sphi %s665_s10, %s782_s10   ;;  %s625_s9 = sphi %s663_s9, %s781_s9  }
   0x7   : > { %p32_p0 = scmp.ge.s32.totalorder %s30_s16, 2  ;;  %s39_s17 = sadd.s32 1, %s633_s11 }
   0x8   : > { %p46_p1 = scmp.ne.s32.totalorder %s633_s11, %s629_s10  ;;  %p47_p2 = scmp.eq.s32.totalorder %s645_s14, 0 }
   0x9   : > { %s787_s16 = smov (%p32_p0, %s30_s16), 0  ;;  %p52_p4 = scmp.ne.s32.totalorder %s629_s10, %s625_s9 }
   0xa   : > { %p699_p3 = por %p47_p2, %p46_p1  ;;  %s34_s19 = ssub.s32 %s641_s13, %s787_s16 }
   0xb   : > { %p53_p5 = scmp.eq.s32.totalorder %s445_s15, 0  ;;  %p37_p6 = scmp.eq.s32.totalorder %s34_s19, 0 }
   0xc   : > { %p475_p8 = scmp.lt.s32.totalorder %s645_s14, 2  ;;  %s132_s22 = sand.u32 1, %s633_s11  }
   0xd   : > { %p706_p7 = por %p53_p5, %p52_p4  ;;  %s461_s23 = sshll.u32 %s641_s13, 3 }
   0xe   : > { %s712_s21 = scalar_select %p37_p6, %s633_s11, %s39_s17  }
   0xf   : > { %s449_s24 = sshll.u32 %s132_s22, 3  ;;  %s143_s27 = scalar_lea.hbm %s775_s0, %s461_s23 }
  0x10   : > { %s145_s28 = sshll.u32 %s143_s27, 4  ;;  %s136_s29 = scalar_lea.vmem [#allocation2], %s449_s24  ;;  %s146_s28 = int_to_ptr.hbm [resolvable:$true] %s145_s28 }
  0x11   : > { %s147_s30 = sshll.u32 %s136_s29, 4  ;;  %p721_p9 = pnand %p475_p8, %p699_p3  ;;  %s148_s30 = int_to_ptr.vmem [resolvable:$true] %s147_s30 }
  0x12   : > { %p454_p10 = scmp.ge.s32.totalorder %s645_s14, 1  ;;  %p173_p11 = scmp.lt.s32.totalorder %s645_s14, 3 }
  0x13   : > { %s452_s4 = sshll.u32 %s132_s22, 1  ;;  %s133_s5 = scalar_lea.sflag [#allocation3], %s132_s22 }
  0x14   : > { %471 = dma.hbm_to_vmem [thread:$0]  (!%p721_p9), %s146_s28, 128, %s148_s30, %s133_s5  }
  0x15   : > { %p174_p12 = pnand %p454_p10, %p173_p11  ;;  %s453_s6 = sshll.u32 %s641_s13, 1 }
  0x16   : > { %s158_s7 = scalar_lea.vmem [#allocation4], %s452_s4  ;;  %s164_s17 = scalar_lea.hbm %s776_s1, %s453_s6 }
  0x17   : > { %s168_s8 = sshll.u32 %s158_s7, 4  ;;  %s166_s18 = sshll.u32 %s164_s17, 4  ;;  %s169_s8 = int_to_ptr.vmem [resolvable:$true] %s168_s8  ;;  %s167_s18 = int_to_ptr.hbm [resolvable:$true] %s166_s18 }
  0x18   : > { %s155_s19 = scalar_lea.sflag [#allocation5], %s132_s22  ;;  %177 = sbr.rel (%p174_p12) target bundleno = 287 (0x11f), region = 28 }
  0x19   : > { %474 = dma.hbm_to_vmem [thread:$0]  (!%p721_p9), %s167_s18, 32, %s169_s8, %s155_s19  }
  0x1a   : > { %s179_s23 = sand.u32 (!%p174_p12), 1, %s629_s10  }
  0x1b   : > { %s455_s24 = sshll.u32 (!%p174_p12), %s179_s23, 3  ;;  %s180_s25 = scalar_lea.sflag (!%p174_p12), [#allocation3], %s179_s23 }
  0x1c   : > { %s183_s26 = scalar_lea.vmem (!%p174_p12), [#allocation2], %s455_s24 }
  0x1d   : > { %616 = dma.done.wait (%p706_p7), %s180_s25, 128  }
  0x1e   : > { %618 = vsyncadd (%p706_p7), %s180_s25, 4294967168  ;;  %s456_s27 = sshll.u32 %s179_s23, 1  ;;  %s190_s28 = scalar_lea.sflag [#allocation5], %s179_s23 }
  0x1f   : > { %s193_s29 = scalar_lea.vmem [#allocation4], %s456_s27 }
  0x20   : > { %620 = dma.done.wait (%p706_p7), %s190_s28, 32  }
  0x21   : > { %622 = vsyncadd (%p706_p7), %s190_s28, 4294967264  ;;  %v229_v0 = vld [vmem:[%s183_s26] sm:$0xff]  ;;  %vm237_vm0 = vcmask 1043456   ;;  %v286_v15 = vlaneseq  ;;  %v230_v16 = vld [vmem:[%s193_s29] sm:$0x3]  ;;  %v647_v26 = vmov 0.0  }
  0x22   : > { %232 = vst [vmem:[#allocation1] ss:$2 sm:$0xff] %v229_v0  ;;  %v289_v21 = vperm.slane %v230_v16, 1  ;;  %v288_v25 = vperm.slane %v230_v16, 0  ;;  %vm324_vm3 = vcmask 1040384   ;;  %p223_p13 = scmp.lt.s32.totalorder %s637_s12, 1 }
  0x23   : > { %v287_v20 = vshrl.u32 %v286_v15, 7  ;;  %vm338_vm4 = vcmask 0  }
  0x24   : > { %s789_s12 = smov (!%p223_p13, %s637_s12), 1 }
  0x25   : > { %vm291_vm1 = vcmp.eq.s32.totalorder %v287_v20, %v289_v21  ;;  %vm290_vm2 = vcmp.eq.s32.totalorder %v287_v20, %v288_v25  ;;  %s228_s30 = scalar_lea.vmem %s777_s2, %s789_s12 }
  0x26   : > { %v458_v27 = vsel %vm291_vm1, 1.0, %v647_v26  ;;  %v457_v29 = vsel %vm290_vm2, 1.0, %v647_v26 }
  0x27   : > { %v298_v28 = vrot.slane %v458_v27, 4 }
  0x29   : > { %v233_v1 = vld.sshfl [vmem:[#allocation1] sm:$0xff pattern:$0x75316420]  ;;  %v234_v2 = vld.sshfl [vmem:[#allocation1 + $0x8] sm:$0xff pattern:$0x75316420]  ;;  %v299_v31 = vsel %vm237_vm0, %v457_v29, %v298_v28 }
  0x2a   : > { %v238_v3 = vsel %vm237_vm0, %v233_v1, -inf  ;;  %v245_v4 = vsel %vm237_vm0, %v234_v2, -inf  ;;  %v301_v32 = vmul.f32 %v299_v31, %v229_v0 }
  0x2b   : > { %v239_v5 = vrot.slane %v238_v3, 4  ;;  %v246_v6 = vrot.slane %v245_v4, 4 }
  0x2d   : > { %v240_v7 = vmax.f32 %v238_v3, %v239_v5  ;;  %v247_v8 = vmax.f32 %v245_v4, %v246_v6 }
  0x2f   : > { %v241_v9 = vrot.slane %v240_v7, 2  ;;  %v248_v10 = vrot.slane %v247_v8, 2 }
  0x31   : > { %v242_v11 = vmax.f32 %v240_v7, %v241_v9  ;;  %v249_v12 = vmax.f32 %v247_v8, %v248_v10 }
  0x33   : > { %v243_v13 = vrot.slane %v242_v11, 1  ;;  %v250_v14 = vrot.slane %v249_v12, 1 }
  0x35   : > { %v244_v17 = vmax.f32 %v242_v11, %v243_v13  ;;  %v251_v18 = vmax.f32 %v249_v12, %v250_v14 }
  0x37   : > { %v254_v19 = vrot.slane %v251_v18, 4 }
  0x39   : > { %v255_v22 = vsel %vm237_vm0, %v244_v17, %v254_v19 }
  0x3a   : > { %v257_v23 = vsub.f32 %v229_v0, %v255_v22 }
  0x3c   : > { %v258_v24 = vmul.f32 1.442695, %v257_v23 }
  0x3e   : > { %525 = vpow2.f32 %v258_v24 }
  0x44   : > { %v526_v30 = vpop.eup %525 }
  0x45   : > { %261 = vst [vmem:[#allocation1] ss:$2 sm:$0xff] %v526_v30 }
  0x4c   : > { %v262_v33 = vld.sshfl [vmem:[#allocation1] sm:$0xff pattern:$0x75316420]  ;;  %v263_v34 = vld.sshfl [vmem:[#allocation1 + $0x8] sm:$0xff pattern:$0x75316420] }
  0x4d   : > { %v266_v35 = vsel %vm237_vm0, %v262_v33, 0.0  ;;  %v273_v36 = vsel %vm237_vm0, %v263_v34, 0.0  ;;  %303 = vst [vmem:[#allocation1] ss:$2 sm:$0xff] %v301_v32 }
  0x4e   : > { %v267_v37 = vrot.slane %v266_v35, 4  ;;  %v274_v38 = vrot.slane %v273_v36, 4 }
  0x50   : > { %v268_v39 = vadd.f32 %v267_v37, %v266_v35  ;;  %v275_v40 = vadd.f32 %v274_v38, %v273_v36 }
  0x52   : > { %v269_v41 = vrot.slane %v268_v39, 2  ;;  %v276_v42 = vrot.slane %v275_v40, 2 }
  0x54   : > { %v270_v43 = vadd.f32 %v269_v41, %v268_v39  ;;  %v277_v44 = vadd.f32 %v276_v42, %v275_v40  ;;  %v304_v45 = vld.sshfl [vmem:[#allocation1] sm:$0xff pattern:$0x75316420]  ;;  %v305_v46 = vld.sshfl [vmem:[#allocation1 + $0x8] sm:$0xff pattern:$0x75316420] }
  0x55   : > { %v308_v47 = vsel %vm237_vm0, %v304_v45, 0.0  ;;  %v315_v48 = vsel %vm237_vm0, %v305_v46, 0.0 }
  0x56   : > { %v271_v49 = vrot.slane %v270_v43, 1  ;;  %v278_v50 = vrot.slane %v277_v44, 1  ;;  %v309_v51 = vrot.slane %v308_v47, 4  ;;  %v316_v52 = vrot.slane %v315_v48, 4 }
  0x58   : > { %v272_v53 = vadd.f32 %v271_v49, %v270_v43  ;;  %v279_v54 = vadd.f32 %v278_v50, %v277_v44  ;;  %v310_v55 = vadd.f32 %v309_v51, %v308_v47  ;;  %v317_v56 = vadd.f32 %v316_v52, %v315_v48 }
  0x5a   : > { %527 = vlog2.f32 %v272_v53  ;;  %v311_v57 = vrot.slane %v310_v55, 2  ;;  %v318_v58 = vrot.slane %v317_v56, 2 }
  0x5b   : > { %529 = vlog2.f32 %v279_v54 }
  0x5c   : > { %v312_v59 = vadd.f32 %v311_v57, %v310_v55  ;;  %v319_v60 = vadd.f32 %v318_v58, %v317_v56 }
  0x5e   : > { %v313_v61 = vrot.slane %v312_v59, 1  ;;  %v320_v62 = vrot.slane %v319_v60, 1 }
  0x60   : > { %v528_v63 = vpop.eup %527  ;;  %v314_v2 = vadd.f32 %v313_v61, %v312_v59  ;;  %v321_v4 = vadd.f32 %v320_v62, %v319_v60 }
  0x61   : > { %v530_v0 = vpop.eup %529  ;;  %v281_v1 = vmul.f32 0.6931472, %v528_v63 }
  0x62   : > { %v283_v3 = vmul.f32 0.6931472, %v530_v0 }
  0x63   : > { %v284_v5 = vadd.f32 %v281_v1, %v244_v17 }
  0x64   : > { %v285_v6 = vadd.f32 %v283_v3, %v251_v18 }
  0x65   : > { %v322_v7 = vsub.f32 %v284_v5, %v314_v2 }
  0x66   : > { %v323_v8 = vsub.f32 %v285_v6, %v321_v4 }
  0x67   : > { %v325_v9 = vsel %vm324_vm3, %v322_v7, 0.0 }
  0x68   : > { %v326_v10 = vsel %vm324_vm3, %v323_v8, 0.0 }
  0x69   : > { %v327_v11 = vadd.f32 %v326_v10, %v325_v9 }
  0x6b   : > { %328 = vadd.xlane.f32.xlu0 %v327_v11 }
  0xde   : > { %v329_v12 = vpop.xlane.xlu0 %328 }
  0xdf   : > { %v330_v13 = vrot.slane %v329_v12, 4 }
  0xe1   : > { %v331_v14 = vadd.f32 %v330_v13, %v329_v12 }
  0xe3   : > { %v332_v15 = vrot.slane %v331_v14, 2 }
  0xe5   : > { %v333_v16 = vadd.f32 %v332_v15, %v331_v14 }
  0xe7   : > { %v334_v19 = vrot.slane %v333_v16, 1 }
  0xe9   : > { %v335_v20 = vadd.f32 %v334_v19, %v333_v16 }
  0xeb   : > { %462 = vpush %v335_v20 }
 0x11c   : > { %s463_s3 = spop %462 }
 0x11d   : > { %v337_v17 = vstv %s463_s3 }
 0x11e   : > { %339 = vst.msk [vmem:[%s228_s30] sm:$0x1] %vm338_vm4, %v337_v17 }
 0x11f PF: > { %s18_s14 = sadd.s32 1, %s645_s14   ;;  %s781_s9 = smov %s629_s10 }
 0x120   : > { %p15_p0 = scmp.ge.s32.totalorder %s18_s14, 4   ;;  %s782_s10 = smov %s633_s11 }
 0x121   : > { %s783_s11 = smov %s712_s21  ;;  %s784_s12 = smov %s641_s13 }
 0x122   : > { %s785_s13 = smov %s787_s16  ;;  %17 = sbr.rel (!%p15_p0) target bundleno = 6 (0x6), region = 81 }
 0x127   :  { %363 = vsyncpa [#allocation3], 1 }
 0x128   :  { %365 = vsyncpa [#allocation3 + $0x1], 1 }
 0x129   :  { %366 = vsyncpa [#allocation5], 1 }
 0x12a   :  { %368 = vsyncpa [#allocation5 + $0x1], 1 }

</bundles_post_ra>
